<compile_context>
chip_gen: v7x
topology: tpu7x:2x2x1
jax: 0.10.0
libtpu: 0.0.40
codegen_flags: <defaults>
</compile_context>

<pallas_src>
import jax
import jax.numpy as jnp
from jax.experimental import pallas as pl
from jax.experimental.pallas import tpu as pltpu


def _mlp_kernel(p1_ref, p2_ref, xt_ref, o_ref):
    middle = p1_ref.shape[0]

    xt = xt_ref[...]                              # (2, bb)  batch on lanes

    # ---- Layer 1: K=2 contraction as VPU broadcast-FMA (no MXU) ----
    w1c0 = p1_ref[:, 0:1]                         # (middle, 1)  column 0 of W1
    w1c1 = p1_ref[:, 1:2]                         # (middle, 1)  column 1 of W1
    b1 = p1_ref[:, 2:3]                           # (middle, 1)
    h = w1c0 * xt[0:1, :] + w1c1 * xt[1:2, :] + b1    # (middle, bb)
    h = jnp.maximum(h, 0.0)                       # ReLU (scale1 folded into W2)

    # ---- Layer 2: scales pre-folded into w2_eff / b2_eff ----
    w2 = p2_ref[:, :middle]                       # (2, middle)
    b2 = p2_ref[:, middle:middle + 1]             # (2, 1)
    o_ref[...] = jnp.dot(w2, h, preferred_element_type=jnp.float32) + b2   # (2, bb)


def model_xor2_forward(x, w1, b1, s1, w2, b2, s2, *, block_b=1024):
    """x: (B, 2) f32.  w1: (middle, 2), b1/s1: (middle,), w2: (2, middle), b2/s2: (2,)."""
    B = x.shape[0]
    middle = w1.shape[0]

    # Fold static scales into second-layer weights/bias (constant param prep).
    w2_eff = (w2 * s1[None, :]) * s2[:, None]               # (2, middle)
    b2_eff = b2 * s2                                        # (2,)

    # Pack tiny parameter operands into two buffers (fewer DMA descriptors).
    p1 = jnp.concatenate([w1, b1.reshape(middle, 1)], axis=1)        # (middle, 3)
    p2 = jnp.concatenate([w2_eff, b2_eff.reshape(2, 1)], axis=1)     # (2, middle+1)

    # Batch-on-lanes: features first, batch on the fast (lane) dim.
    xt = x.T                                                # (2, B)

    bb = min(block_b, B)                                    # block_b multiple of 128, or full B
    grid = (pl.cdiv(B, bb),)

    out_t = pl.pallas_call(
        _mlp_kernel,
        out_shape=jax.ShapeDtypeStruct((2, B), jnp.float32),
        grid=grid,
        in_specs=[
            pl.BlockSpec((middle, 3), lambda i: (0, 0)),            # resident params
            pl.BlockSpec((2, middle + 1), lambda i: (0, 0)),        # resident params
            pl.BlockSpec((2, bb), lambda i: (0, i)),                # batch tile of x^T
        ],
        out_specs=pl.BlockSpec((2, bb), lambda i: (0, i)),
        compiler_params=pltpu.CompilerParams(
            dimension_semantics=("parallel",)),
    )(p1, p2, xt)

    return out_t.T                                          # back to (B, 2)


def init_params(key, middle):
    """Deterministic parameter init matching Model_Xor2.init()."""
    k1, k2 = jax.random.split(key)
    # kaiming_normal_(linear1.weight, nonlinearity='relu'): std = sqrt(2 / fan_in), fan_in = 2
    w1_std = (2.0 / 2.0) ** 0.5
    w1 = jax.random.normal(k1, (middle, 2), dtype=jnp.float32) * w1_std
    b1 = jnp.zeros((middle,), dtype=jnp.float32)
    s1 = jnp.ones((middle,), dtype=jnp.float32)
    # xavier_normal_(linear2.weight): std = sqrt(2 / (fan_in + fan_out)) = sqrt(2/(middle+2))
    w2_std = (2.0 / (middle + 2.0)) ** 0.5
    w2 = jax.random.normal(k2, (2, middle), dtype=jnp.float32) * w2_std
    b2 = jnp.zeros((2,), dtype=jnp.float32)
    s2 = jnp.ones((2,), dtype=jnp.float32)
    return w1, b1, s1, w2, b2, s2


def reference_forward(x, w1, b1, s1, w2, b2, s2):
    h = jnp.maximum(x @ w1.T + b1, 0.0) * s1
    return (h @ w2.T + b2) * s2


if __name__ == "__main__":
    key = jax.random.PRNGKey(0)
    kx, kp = jax.random.split(key)

    batch = 8
    middle = 32

    x = jax.random.normal(kx, (batch, 2), dtype=jnp.float32)
    params = init_params(kp, middle)

    # Use non-trivial scales so the fold is actually exercised.
    w1, b1, s1, w2, b2, s2 = params
    s1 = s1 * 1.5
    s2 = s2 * 0.75
    b2 = b2 + 0.1
    params = (w1, b1, s1, w2, b2, s2)

    out = model_xor2_forward(x, *params)
    out = jax.block_until_ready(out)

    ref = reference_forward(x, *params)
    assert out.shape == (batch, 2), out.shape
    assert jnp.allclose(out, ref, atol=1e-5, rtol=1e-5), (out, ref)

    print("KERNEL_OK")
</pallas_src>

<mosaic_0001>
module attributes {stable_mosaic.version = 11 : i64} {
  func.func @_mlp_kernel(%arg0: i32, %arg1: memref<32x3xf32, #tpu.memory_space<vmem>>, %arg2: memref<2x33xf32, #tpu.memory_space<vmem>>, %arg3: memref<2x8xf32, #tpu.memory_space<vmem>>, %arg4: memref<2x8xf32, #tpu.memory_space<vmem>>) attributes {dimension_semantics = [#tpu.dimension_semantics<parallel>], iteration_bounds = array<i64: 1>, scalar_prefetch = 0 : i64, scratch_operands = 0 : i64, tpu.core_type = #tpu.core_type<tc>, window_params = [{pipeline_mode = #tpu.pipeline_mode<synchronous>, transform_indices = @transform_0, window_bounds = array<i64: 32, 3>}, {pipeline_mode = #tpu.pipeline_mode<synchronous>, transform_indices = @transform_1, window_bounds = array<i64: 2, 33>}, {transform_indices = @transform_2, window_bounds = array<i64: 2, 8>}, {transform_indices = @transform_3, window_bounds = array<i64: 2, 8>}]} {
    %c0 = arith.constant 0 : index
    %c0_0 = arith.constant 0 : index
    %0 = vector.load %arg3[%c0, %c0_0] : memref<2x8xf32, #tpu.memory_space<vmem>>, vector<2x8xf32>
    %c0_1 = arith.constant 0 : index
    %c0_2 = arith.constant 0 : index
    %1 = vector.load %arg1[%c0_1, %c0_2] : memref<32x3xf32, #tpu.memory_space<vmem>>, vector<32x1xf32>
    %c0_3 = arith.constant 0 : index
    %c1 = arith.constant 1 : index
    %2 = vector.load %arg1[%c0_3, %c1] : memref<32x3xf32, #tpu.memory_space<vmem>>, vector<32x1xf32>
    %c0_4 = arith.constant 0 : index
    %c2 = arith.constant 2 : index
    %3 = vector.load %arg1[%c0_4, %c2] : memref<32x3xf32, #tpu.memory_space<vmem>>, vector<32x1xf32>
    %4 = vector.extract_strided_slice %0 {offsets = [0, 0], sizes = [1, 8], strides = [1, 1]} : vector<2x8xf32> to vector<1x8xf32>
    %5 = vector.broadcast %1 : vector<32x1xf32> to vector<32x8xf32>
    %6 = vector.broadcast %4 : vector<1x8xf32> to vector<32x8xf32>
    %7 = arith.mulf %5, %6 : vector<32x8xf32>
    %8 = vector.extract_strided_slice %0 {offsets = [1, 0], sizes = [1, 8], strides = [1, 1]} : vector<2x8xf32> to vector<1x8xf32>
    %9 = vector.broadcast %2 : vector<32x1xf32> to vector<32x8xf32>
    %10 = vector.broadcast %8 : vector<1x8xf32> to vector<32x8xf32>
    %11 = arith.mulf %9, %10 : vector<32x8xf32>
    %12 = arith.addf %7, %11 : vector<32x8xf32>
    %13 = vector.broadcast %3 : vector<32x1xf32> to vector<32x8xf32>
    %14 = arith.addf %12, %13 : vector<32x8xf32>
    %cst = arith.constant 0.000000e+00 : f32
    %15 = vector.broadcast %cst : f32 to vector<32x8xf32>
    %16 = arith.maximumf %14, %15 : vector<32x8xf32>
    %c0_5 = arith.constant 0 : index
    %c0_6 = arith.constant 0 : index
    %17 = vector.load %arg2[%c0_5, %c0_6] : memref<2x33xf32, #tpu.memory_space<vmem>>, vector<2x32xf32>
    %c0_7 = arith.constant 0 : index
    %c32 = arith.constant 32 : index
    %18 = vector.load %arg2[%c0_7, %c32] : memref<2x33xf32, #tpu.memory_space<vmem>>, vector<2x1xf32>
    %cst_8 = arith.constant dense<0.000000e+00> : vector<2x8xf32>
    %19 = tpu.matmul %17, %16, %cst_8 {dimension_numbers = #tpu.dot_dimension_numbers<[1], [0], [0], [1], [0, 0, 1, 1], [], []>} : vector<2x32xf32>, vector<32x8xf32>, vector<2x8xf32> -> vector<2x8xf32>
    %20 = vector.broadcast %18 : vector<2x1xf32> to vector<2x8xf32>
    %21 = arith.addf %19, %20 : vector<2x8xf32>
    %c0_9 = arith.constant 0 : index
    %c0_10 = arith.constant 0 : index
    %22 = vector.load %arg4[%c0_9, %c0_10] : memref<2x8xf32, #tpu.memory_space<vmem>>, vector<2x8xf32>
    tpu.vector_store %arg4[%c0_9, %c0_10], %21 {strides = array<i32>} : memref<2x8xf32, #tpu.memory_space<vmem>>, vector<2x8xf32>,
    return
  }
  func.func @transform_0(%arg0: i32) -> (i32, i32) {
    %c0_i32 = arith.constant 0 : i32
    %c0_i32_0 = arith.constant 0 : i32
    %c0_i32_1 = arith.constant 0 : i32
    return %c0_i32, %c0_i32_0 : i32, i32
  }
  func.func @transform_1(%arg0: i32) -> (i32, i32) {
    %c0_i32 = arith.constant 0 : i32
    %c0_i32_0 = arith.constant 0 : i32
    %c0_i32_1 = arith.constant 0 : i32
    return %c0_i32, %c0_i32_0 : i32, i32
  }
  func.func @transform_2(%arg0: i32) -> (i32, i32) {
    %c0_i32 = arith.constant 0 : i32
    %c0_i32_0 = arith.constant 0 : i32
    return %c0_i32, %arg0 : i32, i32
  }
  func.func @transform_3(%arg0: i32) -> (i32, i32) {
    %c0_i32 = arith.constant 0 : i32
    %c0_i32_0 = arith.constant 0 : i32
    return %c0_i32, %arg0 : i32, i32
  }
}

</mosaic_0001>

<bundles_post_ra>
// kernel: tpu_custom_call.1
= control target key start
LH: loop header
LB: loop body
LE: loop exit
PB: predicated region body
PF: predicated region fallthrough
CT: control target
= control target key end

     0   :  { %v258_v1 = vmov 1   ;;  %v259_v2 = vmov 0   ;;  %s316_s0 = inlined_call_operand.vmem [shape: f32[32,3], index: 0, kind: input, shape index: {}]   ;;  %s317_s1 = inlined_call_operand.vmem [shape: f32[2,33], index: 1, kind: input, shape index: {}]   ;;  %s318_s2 = inlined_call_operand.vmem [shape: f32[2,8], index: 2, kind: input, shape index: {}]   ;;  %s319_s3 = inlined_call_operand.hbm [shape: f32[2,8], index: 3, kind: output, shape index: {}]  }
   0x1   :  { %v16_v0 = vld [vmem:[%s316_s0] sm:$0xff]  ;;  %227 = vset.pattern.permute.xlu1 %v258_v1  ;;  %226 = vset.pattern.permute.xlu0 %v259_v2 }
   0x2   :  { %8 = vsyncpa [#allocation3], 0  ;;  %49 = vperm.xlu1 %227, %v16_v0   ;;  %22 = vperm.xlu0 %226, %v16_v0   ;;  %v17_v3 = vld [vmem:[%s316_s0 + $0x8] sm:$0xff]  ;;  %v18_v4 = vld [vmem:[%s316_s0 + $0x10] sm:$0xff]  ;;  %v260_v6 = vmov 2   ;;  %v261_v7 = vmov 0.0|0.0   ;;  %v40_v11 = vlaneseq }
   0x3   :  { %v19_v5 = vld [vmem:[%s316_s0 + $0x18] sm:$0xff]  ;;  %212 = vmatprep.subr.bf16.mxu0 %v261_v7  ;;  %vm262_vm0 = vmmov 0   ;;  %v263_v8 = vmov 0.0   ;;  %v100_v9 = vld [vmem:[%s317_s1] sm:$0x3]  ;;  %v264_v10 = vmov 32  }
   0x4   :  { %209 = vmatprep.mubr.msk.f32.mxu0 %vm262_vm0, %v263_v8  ;;  %v41_v14 = vshrl.u32 %v40_v11, 7  ;;  %v15_v19 = vld [vmem:[%s318_s2] sm:$0x3]  ;;  %vm106_vm1 = vcmask 261120   ;;  %s265_s1 = smov [#allocation2]   ;;  %vm179_vm2 = vcmask 58368  }
   0x5   :  { %s187_s2 = sshll.u32 %s265_s1, 4  ;;  %s188_s2 = int_to_ptr.vmem [resolvable:$true] %s187_s2 }
   0x6   :  { %53 = vperm.xlu1 %227, %v17_v3   ;;  %27 = vperm.xlu0 %226, %v17_v3   ;;  %v66_v17 = vsub.s32 1, %v41_v14  ;;  %v42_v18 = vsub.s32 0, %v41_v14  ;;  %s234_s23 = scalar_lea.vmem %s188_s2, 32  ;;  %p239_p1 = scmp.lt.s32.totalorder %s188_s2, %s188_s2 }
   0x7   :  { %p235_p0 = scmp.ne.s32.totalorder %s188_s2, %s234_s23  ;;  %p240_p2 = scmp.lt.s32.totalorder %s234_s23, %s234_s23 }
   0x8   :  { %v67_v22 = vrot.slane %v15_v19, %v66_v17  ;;  %v43_v23 = vrot.slane %v15_v19, %v42_v18 }
   0x9   :  { %p241_p3 = por %p240_p2, %p239_p1 }
   0xa   :  { %228 = vset.pattern.permute.xlu1 %v259_v2  ;;  %32 = vperm.xlu0 %226, %v18_v4  }
   0xb   :  { %37 = vperm.xlu1 %228, %v19_v5   ;;  %p242_p4 = pnand %p241_p3, %p235_p0 }
   0xe   :  { %229 = vset.pattern.permute.xlu0 %v258_v1 }
   0xf   :  { %230 = vset.pattern.permute.xlu1 %v258_v1  ;;  %57 = vperm.xlu0 %229, %v18_v4  }
  0x10   :  { %61 = vperm.xlu1 %230, %v19_v5  }
  0x13   :  { %232 = vset.pattern.permute.xlu0 %v260_v6 }
  0x14   :  { %231 = vset.pattern.permute.xlu1 %v260_v6  ;;  %81 = vperm.xlu0 %232, %v17_v3  }
  0x15   :  { %77 = vperm.xlu1 %231, %v16_v0  }
  0x18   :  { %233 = vset.pattern.permute.xlu0 %v264_v10 }
  0x19   :  { %85 = vperm.xlu1 %231, %v18_v4   ;;  %103 = vperm.xlu0 %233, %v100_v9  }
  0x1d   :  { %89 = vperm.xlu1 %231, %v19_v5  }
  0x81   :  { %v50_v12 = vpop.permute.xlu1 %49  ;;  %v23_v13 = vpop.permute.xlu0 %22 }
  0x82   :  { %v68_v27 = vmul.f32 %v67_v22, %v50_v12  ;;  %v44_v28 = vmul.f32 %v43_v23, %v23_v13 }
  0x84   :  { %v72_v32 = vadd.f32 %v68_v27, %v44_v28 }
  0x85   :  { %v54_v15 = vpop.permute.xlu1 %53  ;;  %v28_v16 = vpop.permute.xlu0 %27 }
  0x86   :  { %v69_v24 = vmul.f32 %v67_v22, %v54_v15  ;;  %v45_v25 = vmul.f32 %v43_v23, %v28_v16 }
  0x88   :  { %v73_v30 = vadd.f32 %v69_v24, %v45_v25 }
  0x89   :  { %v33_v20 = vpop.permute.xlu0 %32 }
  0x8a   :  { %v38_v21 = vpop.permute.xlu1 %37  ;;  %v46_v38 = vmul.f32 %v43_v23, %v33_v20 }
  0x8b   :  { %v47_v42 = vmul.f32 %v43_v23, %v38_v21 }
  0x8e   :  { %v58_v26 = vpop.permute.xlu0 %57 }
  0x8f   :  { %v62_v29 = vpop.permute.xlu1 %61  ;;  %v70_v35 = vmul.f32 %v67_v22, %v58_v26 }
  0x90   :  { %v71_v39 = vmul.f32 %v67_v22, %v62_v29 }
  0x91   :  { %v74_v43 = vadd.f32 %v70_v35, %v46_v38 }
  0x92   :  { %v75_v46 = vadd.f32 %v71_v39, %v47_v42 }
  0x93   :  { %v82_v31 = vpop.permute.xlu0 %81 }
  0x94   :  { %v93_v33 = vadd.f32 %v82_v31, %v73_v30  ;;  %v78_v34 = vpop.permute.xlu1 %77 }
  0x95   :  { %v92_v36 = vadd.f32 %v78_v34, %v72_v32 }
  0x96   :  { %v97_v37 = vmax.f32 %v93_v33, 0.0 }
  0x97   :  { %v96_v40 = vmax.f32 %v92_v36, 0.0 }
  0x98   :  { %v86_v41 = vpop.permute.xlu1 %85  ;;  %v104_v52 = vpop.permute.xlu0 %103 }
  0x99   :  { %v213_v44 = vpack.c.bf16 %v97_v37, %v96_v40  ;;  %v94_v45 = vadd.f32 %v86_v41, %v74_v43 }
  0x9b   :  { %214 = vmatpush3.bf16.msra.mxu0 %v213_v44  ;;  %v98_v49 = vmax.f32 %v94_v45, 0.0 }
  0x9c   :  { %v90_v47 = vpop.permute.xlu1 %89  ;;  %215 = vmatprep.subr.bf16.mxu0 %v261_v7 }
  0x9d   :  { %v95_v48 = vadd.f32 %v90_v47, %v75_v46 }
  0x9f   :  { %v99_v50 = vmax.f32 %v95_v48, 0.0 }
  0xa1   :  { %v216_v51 = vpack.c.bf16 %v99_v50, %v98_v49 }
  0xa3   :  { %217 = vmatpush3.bf16.msra.mxu0 %v216_v51 }
  0xa6   :  { %210 = vmatmul.mubr.msk.f32.vlgmr.msra.gmra.mrb[0].mxu0 %vm106_vm1, %v100_v9 }
 0x179   :  { %v175_v53 = vpop.f32.mrb[0].mxu0 }
 0x17a   :  { %v176_v54 = vadd.f32 %v175_v53, %v104_v52  ;;  %v211_v55 = vpop.f32.mrb[1].mxu0 }
 0x17c   :  { %180 = vst.msk [vmem:[#allocation2] sm:$0x3] %vm179_vm2, %v176_v54 }
 0x17d   :  { %245 = shalt.err (!%p242_p4)
}
 0x17e   :  { %s246_s26 = scalar_lea.hbm %s319_s3, 32 }
 0x17f   :  { %p247_p5 = scmp.ne.s32.totalorder %s319_s3, %s246_s26  ;;  %p250_p6 = scmp.lt.u32.totalorder %s246_s26, %s319_s3 }
 0x181   :  { %p252_p7 = pnand %p250_p6, %p247_p5 }
 0x183   :  { %255 = shalt.err (!%p252_p7)
}
 0x184   :  { %190 = dma.vmem_to_hbm [thread:$0]  %s188_s2, 32, %s319_s3, [#allocation3]  }
 0x185   :  { %256 = dma.done.wait [#allocation3], 32  }
 0x186   :  { %257 = vsyncadd [#allocation3], 4294967264 }
 0x187   :  { %194 = vsyncpa [#allocation3], 1 }

</bundles_post_ra>
